<compile_context>
chip_gen: v6e
topology: v6e:2x2x1
jax: 0.10.0
libtpu: 0.0.40
codegen_flags: <defaults>
</compile_context>

<pallas_src>
import functools

import jax
import jax.numpy as jnp
from jax import lax
from jax.experimental import pallas as pl
from jax.experimental.pallas import tpu as pltpu

BN_EPS = 1e-5
_LANE = 128
_VMEM_LIMIT_BYTES = 48 * 1024 * 1024      # compiler cap (safe on v7x 64 MiB/TC)
_VMEM_TILE_BUDGET = 28 * 1024 * 1024      # budget assumed when deriving tile_m
_STATS_ROWS = 8                           # sublane-aligned stats block height


def _round_up(x, m):
    return (x + m - 1) // m * m


# ----------------------------- kernels --------------------------------------

def stats_only_kernel(patches_ref, w_ref, stats_ref):
    """Small-K pass 1: matmul for stats only (conv tile is NOT stored)."""
    conv = jnp.dot(patches_ref[...], w_ref[...],
                   preferred_element_type=jnp.float32)
    s = jnp.sum(conv, axis=0, keepdims=True)             # (1, C) channel sum
    q = jnp.sum(conv * conv, axis=0, keepdims=True)      # (1, C) channel sumsq
    pad = jnp.zeros((stats_ref.shape[0] - 2, s.shape[1]), jnp.float32)
    stats_ref[...] = jnp.concatenate([s, q, pad], axis=0)


def conv_stats_kernel(patches_ref, w_ref, conv_ref, stats_ref):
    """Large-K pass 1: matmul, store bf16 conv tile, emit f32 stats partials."""
    conv = jnp.dot(patches_ref[...], w_ref[...],
                   preferred_element_type=jnp.float32)
    conv_ref[...] = conv.astype(conv_ref.dtype)           # bf16 intermediate
    s = jnp.sum(conv, axis=0, keepdims=True)
    q = jnp.sum(conv * conv, axis=0, keepdims=True)
    pad = jnp.zeros((stats_ref.shape[0] - 2, s.shape[1]), jnp.float32)
    stats_ref[...] = jnp.concatenate([s, q, pad], axis=0)


def matmul_bn_relu_kernel(patches_ref, w_ref, scale_ref, shift_ref, out_ref):
    """Small-K pass 2: recompute conv, then y = conv*scale + shift; ReLU."""
    conv = jnp.dot(patches_ref[...], w_ref[...],
                   preferred_element_type=jnp.float32)
    y = conv * scale_ref[...] + shift_ref[...]
    out_ref[...] = jnp.maximum(y, 0.0).astype(out_ref.dtype)


def bn_relu_kernel(conv_ref, scale_ref, shift_ref, out_ref):
    """Large-K pass 2: load bf16 conv tile, y = conv*scale + shift; ReLU."""
    y = conv_ref[...].astype(jnp.float32) * scale_ref[...] + shift_ref[...]
    out_ref[...] = jnp.maximum(y, 0.0).astype(out_ref.dtype)


# ----------------------------- wrapper ---------------------------------------

def _im2col_bf16(x_nchw, ksize, pad, m_pad, k_pad):
    """(N,cin,H,W) -> bf16 (m_pad, k_pad) patches; column order (kh, kw, cin)."""
    n, cin, h, w = x_nchw.shape
    x = jnp.transpose(x_nchw, (0, 2, 3, 1)).astype(jnp.bfloat16)   # NHWC bf16
    xp = jnp.pad(x, ((0, 0), (pad, pad), (pad, pad), (0, 0)))
    cols = [xp[:, i:i + h, j:j + w, :]
            for i in range(ksize) for j in range(ksize)]
    k_true = ksize * ksize * cin
    if k_pad > k_true:
        cols.append(jnp.zeros((n, h, w, k_pad - k_true), jnp.bfloat16))
    patches = jnp.concatenate(cols, axis=-1).reshape(n * h * w, k_pad)
    if m_pad > n * h * w:
        patches = jnp.pad(patches, ((0, m_pad - n * h * w), (0, 0)))
    return patches


def _pick_tile_m(m_true, k_pad, c_pad, store_conv):
    """Derive tile_m from a VMEM byte budget (double-buffered streaming)."""
    if store_conv:
        per_row = max(2 * (k_pad * 2 + c_pad * 2),     # pass 1: patches + bf16 conv
                      2 * (c_pad * 2 + c_pad * 4))     # pass 2: conv + f32 out
    else:
        per_row = 2 * (k_pad * 2 + c_pad * 4)          # pass 2: patches + f32 out
    resident = 2 * (k_pad * c_pad * 2) + 4 * c_pad * 4  # weights (x2) + scale/shift
    tile = (_VMEM_TILE_BUDGET - resident) // per_row
    tile = max(256, min(tile, 8192))
    tile = min(tile, _round_up(m_true, 16))
    # Prefer >=2 tiles when there is enough work so the single "parallel" grid
    # axis load-balances across the two TensorCores on v7x.
    if m_true >= 2048 and tile >= m_true:
        tile = (m_true + 1) // 2
    return max(16, _round_up(tile, 16))


@functools.partial(jax.jit, static_argnames=("ksize", "tile_m"))
def conv_bn_relu(x_nchw, conv_w, conv_b, bn_gamma, bn_beta, *, ksize,
                 tile_m=None):
    # conv bias cancels exactly under train-mode BatchNorm (mean subtraction):
    # identical output, one less DMA/add, and it keeps zero-padded M rows
    # contributing exactly 0 to the batch statistics.
    del conv_b

    n, cin, h, w = x_nchw.shape
    cout = conv_w.shape[0]
    m_true = n * h * w
    k_true = cin * ksize * ksize

    # K blocks span the full K axis, so only bf16 sublane packing (16) is
    # needed -- no 128 padding of the contraction dim.
    k_pad = _round_up(k_true, 16)
    c_pad = _round_up(cout, _LANE)           # lane-dense output channels

    # Small-K layers: recompute the conv matmul in pass 2 instead of storing
    # the (M, C) intermediate (memory-bound => the extra FLOPs are free).
    store_conv = k_pad > 512

    if tile_m is None:
        tile_m = _pick_tile_m(m_true, k_pad, c_pad, store_conv)
    m_pad = _round_up(m_true, tile_m)
    num_tiles = m_pad // tile_m

    patches = _im2col_bf16(x_nchw, ksize, pad=1, m_pad=m_pad, k_pad=k_pad)

    w_mat = jnp.transpose(conv_w, (2, 3, 1, 0)).reshape(k_true, cout)
    w_mat = jnp.pad(w_mat, ((0, k_pad - k_true),
                            (0, c_pad - cout))).astype(jnp.bfloat16)

    cparams = pltpu.CompilerParams(
        dimension_semantics=("parallel",),
        vmem_limit_bytes=_VMEM_LIMIT_BYTES,
    )

    patches_spec = pl.BlockSpec((tile_m, k_pad), lambda i: (i, 0))
    w_spec = pl.BlockSpec((k_pad, c_pad), lambda i: (0, 0))
    stats_spec = pl.BlockSpec((_STATS_ROWS, c_pad), lambda i: (i, 0))
    vec_spec = pl.BlockSpec((1, c_pad), lambda i: (0, 0))
    mtile_spec = pl.BlockSpec((tile_m, c_pad), lambda i: (i, 0))

    stats_shape = jax.ShapeDtypeStruct((num_tiles * _STATS_ROWS, c_pad),
                                       jnp.float32)

    # ---- Pass 1: conv matmul + per-tile channel sum / sumsq ----------------
    if store_conv:
        conv_flat, stats = pl.pallas_call(
            conv_stats_kernel,
            grid=(num_tiles,),
            in_specs=[patches_spec, w_spec],
            out_specs=(mtile_spec, stats_spec),
            out_shape=(jax.ShapeDtypeStruct((m_pad, c_pad), jnp.bfloat16),
                       stats_shape),
            compiler_params=cparams,
        )(patches, w_mat)
    else:
        conv_flat = None
        stats = pl.pallas_call(
            stats_only_kernel,
            grid=(num_tiles,),
            in_specs=[patches_spec, w_spec],
            out_specs=stats_spec,
            out_shape=stats_shape,
            compiler_params=cparams,
        )(patches, w_mat)

    # ---- Fold partials -> global batch stats -> per-channel affine ---------
    stats = stats.reshape(num_tiles, _STATS_ROWS, c_pad)
    ch_sum = jnp.sum(stats[:, 0, :], axis=0)
    ch_ssq = jnp.sum(stats[:, 1, :], axis=0)
    mean = ch_sum / m_true
    var = jnp.maximum(ch_ssq / m_true - mean * mean, 0.0)   # biased (train BN)
    inv_std = lax.rsqrt(var + BN_EPS)
    gamma_p = jnp.pad(bn_gamma.astype(jnp.float32), (0, c_pad - cout))
    beta_p = jnp.pad(bn_beta.astype(jnp.float32), (0, c_pad - cout))
    scale = (gamma_p * inv_std).reshape(1, c_pad)
    shift = (beta_p - mean * gamma_p * inv_std).reshape(1, c_pad)

    # ---- Pass 2: normalize + ReLU, tiled over M ------------------------------
    out_shape = jax.ShapeDtypeStruct((m_pad, c_pad), jnp.float32)
    if store_conv:
        out_flat = pl.pallas_call(
            bn_relu_kernel,
            grid=(num_tiles,),
            in_specs=[mtile_spec, vec_spec, vec_spec],
            out_specs=mtile_spec,
            out_shape=out_shape,
            compiler_params=cparams,
        )(conv_flat, scale, shift)
    else:
        out_flat = pl.pallas_call(
            matmul_bn_relu_kernel,
            grid=(num_tiles,),
            in_specs=[patches_spec, w_spec, vec_spec, vec_spec],
            out_specs=mtile_spec,
            out_shape=out_shape,
            compiler_params=cparams,
        )(patches, w_mat, scale, shift)

    # Back to the module's NCHW interface (in a full NHWC network this
    # transpose/slice disappears).
    out = out_flat[:m_true, :cout].reshape(n, h, w, cout)
    return jnp.transpose(out, (0, 3, 1, 2))


def reference(x_nchw, conv_w, conv_b, bn_gamma, bn_beta):
    """Pure-JAX f32 reference (PyTorch semantics, BN in training mode)."""
    conv = lax.conv_general_dilated(
        x_nchw, conv_w, window_strides=(1, 1), padding=((1, 1), (1, 1)),
        dimension_numbers=("NCHW", "OIHW", "NCHW"),
    ) + conv_b.reshape(1, -1, 1, 1)
    mean = jnp.mean(conv, axis=(0, 2, 3), keepdims=True)
    var = jnp.mean((conv - mean) ** 2, axis=(0, 2, 3), keepdims=True)
    y = (conv - mean) / jnp.sqrt(var + BN_EPS)
    y = y * bn_gamma.reshape(1, -1, 1, 1) + bn_beta.reshape(1, -1, 1, 1)
    return jnp.maximum(y, 0.0)


if __name__ == "__main__":
    key = jax.random.PRNGKey(0)
    keys = jax.random.split(key, 10)
    (k_x, k_w, k_b, k_g, k_be, k_x2, k_w2, k_b2, k_g2, k_be2) = keys

    # --- Test 1: small-K recompute path, multi-tile stats (tile_m=128) ------
    N, CIN, COUT, H, W, KS = 2, 4, 8, 16, 16, 3
    x = jax.random.normal(k_x, (N, CIN, H, W), dtype=jnp.float32)
    conv_w = jax.random.normal(k_w, (COUT, CIN, KS, KS), dtype=jnp.float32) * 0.1
    conv_b = jax.random.normal(k_b, (COUT,), dtype=jnp.float32) * 0.1
    bn_gamma = 1.0 + 0.1 * jax.random.normal(k_g, (COUT,), dtype=jnp.float32)
    bn_beta = 0.1 * jax.random.normal(k_be, (COUT,), dtype=jnp.float32)

    out = conv_bn_relu(x, conv_w, conv_b, bn_gamma, bn_beta, ksize=KS,
                       tile_m=128)
    out = jax.block_until_ready(out)
    ref = reference(x, conv_w, conv_b, bn_gamma, bn_beta)
    assert out.shape == (N, COUT, H, W)
    err1 = float(jnp.max(jnp.abs(out - ref)))
    # Tolerance accounts for bf16 MXU operands (f32 accumulation) vs pure-f32.
    assert jnp.allclose(out, ref, atol=5e-2, rtol=5e-2), (
        "test1 mismatch vs reference, max abs err = %f" % err1)

    # --- Test 2: large-K stored-conv (bf16 intermediate) path, auto tile ----
    N2, CIN2, COUT2, H2, W2 = 2, 64, 64, 8, 8
    x2 = jax.random.normal(k_x2, (N2, CIN2, H2, W2), dtype=jnp.float32)
    conv_w2 = jax.random.normal(
        k_w2, (COUT2, CIN2, KS, KS), dtype=jnp.float32) * 0.05
    conv_b2 = jax.random.normal(k_b2, (COUT2,), dtype=jnp.float32) * 0.1
    bn_gamma2 = 1.0 + 0.1 * jax.random.normal(k_g2, (COUT2,), dtype=jnp.float32)
    bn_beta2 = 0.1 * jax.random.normal(k_be2, (COUT2,), dtype=jnp.float32)

    out2 = conv_bn_relu(x2, conv_w2, conv_b2, bn_gamma2, bn_beta2, ksize=KS)
    out2 = jax.block_until_ready(out2)
    ref2 = reference(x2, conv_w2, conv_b2, bn_gamma2, bn_beta2)
    assert out2.shape == (N2, COUT2, H2, W2)
    err2 = float(jnp.max(jnp.abs(out2 - ref2)))
    assert jnp.allclose(out2, ref2, atol=5e-2, rtol=5e-2), (
        "test2 mismatch vs reference, max abs err = %f" % err2)

    print("KERNEL_OK")
</pallas_src>

<mosaic_0001>
module attributes {stable_mosaic.version = 11 : i64} {
  func.func @stats_only_kernel(%arg0: i32, %arg1: memref<128x48xbf16, #tpu.memory_space<vmem>>, %arg2: memref<48x128xbf16, #tpu.memory_space<vmem>>, %arg3: memref<8x128xf32, #tpu.memory_space<vmem>>) attributes {dimension_semantics = [#tpu.dimension_semantics<parallel>], iteration_bounds = array<i64: 4>, scalar_prefetch = 0 : i64, scratch_operands = 0 : i64, tpu.core_type = #tpu.core_type<tc>, window_params = [{transform_indices = @transform_0, window_bounds = array<i64: 128, 48>}, {pipeline_mode = #tpu.pipeline_mode<synchronous>, transform_indices = @transform_1, window_bounds = array<i64: 48, 128>}, {transform_indices = @transform_2, window_bounds = array<i64: 8, 128>}]} {
    %c0 = arith.constant 0 : index
    %c0_0 = arith.constant 0 : index
    %0 = vector.load %arg1[%c0, %c0_0] : memref<128x48xbf16, #tpu.memory_space<vmem>>, vector<128x48xbf16>
    %c0_1 = arith.constant 0 : index
    %c0_2 = arith.constant 0 : index
    %1 = vector.load %arg2[%c0_1, %c0_2] : memref<48x128xbf16, #tpu.memory_space<vmem>>, vector<48x128xbf16>
    %cst = arith.constant dense<0.000000e+00> : vector<128x128xf32>
    %2 = tpu.matmul %0, %1, %cst {dimension_numbers = #tpu.dot_dimension_numbers<[1], [0], [0], [1], [0, 0, 1, 1], [], []>} : vector<128x48xbf16>, vector<48x128xbf16>, vector<128x128xf32> -> vector<128x128xf32>
    %cst_3 = arith.constant dense<0.000000e+00> : vector<128xf32>
    %3 = vector.multi_reduction <add>, %2, %cst_3 [0] : vector<128x128xf32> to vector<128xf32>
    %4 = vector.shape_cast %3 : vector<128xf32> to vector<1x128xf32>
    %5 = arith.mulf %2, %2 : vector<128x128xf32>
    %cst_4 = arith.constant dense<0.000000e+00> : vector<128xf32>
    %6 = vector.multi_reduction <add>, %5, %cst_4 [0] : vector<128x128xf32> to vector<128xf32>
    %7 = vector.shape_cast %6 : vector<128xf32> to vector<1x128xf32>
    %cst_5 = arith.constant 0.000000e+00 : f32
    %8 = vector.broadcast %cst_5 : f32 to vector<6x128xf32>
    %9 = tpu.concatenate %4, %7, %8 in 0 : vector<1x128xf32>, vector<1x128xf32>, vector<6x128xf32> -> vector<8x128xf32>
    %c0_6 = arith.constant 0 : index
    %c0_7 = arith.constant 0 : index
    %10 = vector.load %arg3[%c0_6, %c0_7] : memref<8x128xf32, #tpu.memory_space<vmem>>, vector<8x128xf32>
    tpu.vector_store %arg3[%c0_6, %c0_7], %9 {strides = array<i32>} : memref<8x128xf32, #tpu.memory_space<vmem>>, vector<8x128xf32>,
    return
  }
  func.func @transform_0(%arg0: i32) -> (i32, i32) {
    %c0_i32 = arith.constant 0 : i32
    %c0_i32_0 = arith.constant 0 : i32
    return %arg0, %c0_i32 : i32, i32
  }
  func.func @transform_1(%arg0: i32) -> (i32, i32) {
    %c0_i32 = arith.constant 0 : i32
    %c0_i32_0 = arith.constant 0 : i32
    %c0_i32_1 = arith.constant 0 : i32
    return %c0_i32, %c0_i32_0 : i32, i32
  }
  func.func @transform_2(%arg0: i32) -> (i32, i32) {
    %c0_i32 = arith.constant 0 : i32
    %c0_i32_0 = arith.constant 0 : i32
    return %arg0, %c0_i32 : i32, i32
  }
}

module attributes {stable_mosaic.version = 11 : i64} {
  func.func @matmul_bn_relu_kernel(%arg0: i32, %arg1: memref<128x48xbf16, #tpu.memory_space<vmem>>, %arg2: memref<48x128xbf16, #tpu.memory_space<vmem>>, %arg3: memref<1x128xf32, #tpu.memory_space<vmem>>, %arg4: memref<1x128xf32, #tpu.memory_space<vmem>>, %arg5: memref<128x128xf32, #tpu.memory_space<vmem>>) attributes {dimension_semantics = [#tpu.dimension_semantics<parallel>], iteration_bounds = array<i64: 4>, scalar_prefetch = 0 : i64, scratch_operands = 0 : i64, tpu.core_type = #tpu.core_type<tc>, window_params = [{transform_indices = @transform_0, window_bounds = array<i64: 128, 48>}, {pipeline_mode = #tpu.pipeline_mode<synchronous>, transform_indices = @transform_1, window_bounds = array<i64: 48, 128>}, {pipeline_mode = #tpu.pipeline_mode<synchronous>, transform_indices = @transform_2, window_bounds = array<i64: 1, 128>}, {pipeline_mode = #tpu.pipeline_mode<synchronous>, transform_indices = @transform_3, window_bounds = array<i64: 1, 128>}, {transform_indices = @transform_4, window_bounds = array<i64: 128, 128>}]} {
    %c0 = arith.constant 0 : index
    %c0_0 = arith.constant 0 : index
    %0 = vector.load %arg1[%c0, %c0_0] : memref<128x48xbf16, #tpu.memory_space<vmem>>, vector<128x48xbf16>
    %c0_1 = arith.constant 0 : index
    %c0_2 = arith.constant 0 : index
    %1 = vector.load %arg2[%c0_1, %c0_2] : memref<48x128xbf16, #tpu.memory_space<vmem>>, vector<48x128xbf16>
    %cst = arith.constant dense<0.000000e+00> : vector<128x128xf32>
    %2 = tpu.matmul %0, %1, %cst {dimension_numbers = #tpu.dot_dimension_numbers<[1], [0], [0], [1], [0, 0, 1, 1], [], []>} : vector<128x48xbf16>, vector<48x128xbf16>, vector<128x128xf32> -> vector<128x128xf32>
    %c0_3 = arith.constant 0 : index
    %c0_4 = arith.constant 0 : index
    %3 = vector.load %arg3[%c0_3, %c0_4] : memref<1x128xf32, #tpu.memory_space<vmem>>, vector<1x128xf32>
    %4 = vector.broadcast %3 : vector<1x128xf32> to vector<128x128xf32>
    %5 = arith.mulf %2, %4 : vector<128x128xf32>
    %c0_5 = arith.constant 0 : index
    %c0_6 = arith.constant 0 : index
    %6 = vector.load %arg4[%c0_5, %c0_6] : memref<1x128xf32, #tpu.memory_space<vmem>>, vector<1x128xf32>
    %7 = vector.broadcast %6 : vector<1x128xf32> to vector<128x128xf32>
    %8 = arith.addf %5, %7 : vector<128x128xf32>
    %cst_7 = arith.constant 0.000000e+00 : f32
    %9 = vector.broadcast %cst_7 : f32 to vector<128x128xf32>
    %10 = arith.maximumf %8, %9 : vector<128x128xf32>
    %c0_8 = arith.constant 0 : index
    %c0_9 = arith.constant 0 : index
    %11 = vector.load %arg5[%c0_8, %c0_9] : memref<128x128xf32, #tpu.memory_space<vmem>>, vector<128x128xf32>
    tpu.vector_store %arg5[%c0_8, %c0_9], %10 {strides = array<i32>} : memref<128x128xf32, #tpu.memory_space<vmem>>, vector<128x128xf32>,
    return
  }
  func.func @transform_0(%arg0: i32) -> (i32, i32) {
    %c0_i32 = arith.constant 0 : i32
    %c0_i32_0 = arith.constant 0 : i32
    return %arg0, %c0_i32 : i32, i32
  }
  func.func @transform_1(%arg0: i32) -> (i32, i32) {
    %c0_i32 = arith.constant 0 : i32
    %c0_i32_0 = arith.constant 0 : i32
    %c0_i32_1 = arith.constant 0 : i32
    return %c0_i32, %c0_i32_0 : i32, i32
  }
  func.func @transform_2(%arg0: i32) -> (i32, i32) {
    %c0_i32 = arith.constant 0 : i32
    %c0_i32_0 = arith.constant 0 : i32
    %c0_i32_1 = arith.constant 0 : i32
    return %c0_i32, %c0_i32_0 : i32, i32
  }
  func.func @transform_3(%arg0: i32) -> (i32, i32) {
    %c0_i32 = arith.constant 0 : i32
    %c0_i32_0 = arith.constant 0 : i32
    %c0_i32_1 = arith.constant 0 : i32
    return %c0_i32, %c0_i32_0 : i32, i32
  }
  func.func @transform_4(%arg0: i32) -> (i32, i32) {
    %c0_i32 = arith.constant 0 : i32
    %c0_i32_0 = arith.constant 0 : i32
    return %arg0, %c0_i32 : i32, i32
  }
}

</mosaic_0001>

<bundles_post_ra>
// kernel: conv_bn_relu.2
= control target key start
LH: loop header
LB: loop body
LE: loop exit
PB: predicated region body
PF: predicated region fallthrough
CT: control target
= control target key end

     0   :  { %s573_s9 = smov 0   ;;  %s612_s0 = inlined_call_operand.vmem [shape: bf16[512,48], index: 0, kind: input, shape index: {}]   ;;  %s613_s1 = inlined_call_operand.vmem [shape: bf16[48,128], index: 1, kind: input, shape index: {}]   ;;  %s614_s2 = inlined_call_operand.vmem [shape: f32[32,128], index: 2, kind: output, shape index: {}]  }
   0x1 LB: > { %s579_s10 = sadd.s32 4294967295, %s556_s9   ;;  %p467_p0 = scmp.ge.s32.totalorder %s556_s9, 1  ;;  %s556_s9 = sphi %s573_s9, %s12_s9  }
   0x2   : > { %p113_p1 = scmp.lt.s32.totalorder %s556_s9, 5 }
   0x4   : > { %p114_p2 = pnand %p467_p0, %p113_p1 }
   0x5   : > { %s468_s13 = sshll.u32 (!%p114_p2), %s579_s10, 4  ;;  %p140_p4 = scmp.lt.s32.totalorder (!%p114_p2), %s579_s10, 3 }
   0x6   : > { %117 = sbr.rel (%p114_p2) target bundleno = 270 (0x10e), region = 28  ;;  %p135_p3 = scmp.lt.s32.totalorder (!%p114_p2), %s468_s13, 63 }
   0xb   : > { %v539_v0 = vld [vmem:[%s613_s1 + $0x10] sm:$0xff]   ;;  %v540_v1 = vld [vmem:[%s613_s1 + $0x8] sm:$0xff]   ;;  %s616_s13 = smov (!%p135_p3, %s468_s13), 63  ;;  %v541_v2 = vld [vmem:[%s613_s1] sm:$0xff]   ;;  %vm225_vm0 = vcmask 392192   ;;  %s618_s10 = smov (!%p140_p4, %s579_s10), 3 }
   0xc   : > { %503 = vmatprep.subr.bf16.mxu0 %v539_v0  ;;  %525 = vmatprep.subr.bf16.mxu1 %v539_v0  ;;  %s469_s18 = sshll.u32 %s616_s13, 2  ;;  %s470_s22 = sshll.u32 %s618_s10, 3  ;;  %vm405_vm1 = vcmask 1040384   ;;  %vm407_vm2 = vcmask 1041408  }
   0xd   : > { %504 = vmatpush3.bf16.msra.mxu0 %v539_v0  ;;  %528 = vmatpush3.bf16.msra.mxu1 %v539_v0  ;;  %s138_s21 = scalar_lea.vmem %s612_s0, %s469_s18  ;;  %s143_s25 = scalar_lea.vmem %s614_s2, %s470_s22 }
   0xe   : > { %505 = vmatprep.subr.bf16.mxu0 %v540_v1  ;;  %526 = vmatprep.subr.bf16.mxu1 %v540_v1  ;;  %v542_v3 = vld [vmem:[%s138_s21] sm:$0xff]   ;;  %v543_v4 = vld [vmem:[%s138_s21 + $0x8] sm:$0xff]   ;;  %v544_v5 = vld [vmem:[%s138_s21 + $0x10] sm:$0xff]  }
   0xf   : > { %509 = vmatprep.mubr.msk.bf16.mxu0 %vm225_vm0, %v542_v3  ;;  %v546_v6 = vld [vmem:[%s138_s21 + $0x20] sm:$0xff]   ;;  %v547_v7 = vld [vmem:[%s138_s21 + $0x28] sm:$0xff]   ;;  %v548_v8 = vld [vmem:[%s138_s21 + $0x30] sm:$0xff]  }
  0x10   : > { %517 = vmatprep.mubr.msk.bf16.mxu1 %vm225_vm0, %v546_v6  ;;  %v545_v9 = vld [vmem:[%s138_s21 + $0x18] sm:$0xff]  }
  0x11   : > { %506 = vmatpush3.bf16.msra.mxu0 %v540_v1  ;;  %529 = vmatpush3.bf16.msra.mxu1 %v540_v1  ;;  %v549_v10 = vld [vmem:[%s138_s21 + $0x38] sm:$0xff]  }
  0x12   : > { %507 = vmatprep.subr.bf16.mxu0 %v541_v2  ;;  %527 = vmatprep.subr.bf16.mxu1 %v541_v2 }
  0x15   : > { %508 = vmatpush3.bf16.msra.mxu0 %v541_v2  ;;  %530 = vmatpush3.bf16.msra.mxu1 %v541_v2 }
  0x18   : > { %510 = vmatmul.mubr.msk.bf16.vlgmr.msra.gmra.mxu0 %vm225_vm0, %v543_v4  ;;  %518 = vmatmul.mubr.msk.bf16.vlgmr.msra.gmra.mxu1 %vm225_vm0, %v547_v7 }
  0x19   : > { %513 = vmatprep.mubr.msk.bf16.mxu0 %vm225_vm0, %v544_v5  ;;  %521 = vmatprep.mubr.msk.bf16.mxu1 %vm225_vm0, %v548_v8 }
  0x20   : > { %514 = vmatmul.mubr.msk.bf16.gmra.mxu0 %vm225_vm0, %v545_v9  ;;  %522 = vmatmul.mubr.msk.bf16.gmra.mxu1 %vm225_vm0, %v549_v10 }
  0xd8   : > { %v511_v11 = vpop.f32.mrf.mxu0  ;;  %v519_v12 = vpop.f32.mrf.mxu1 }
  0xd9   : > { %v370_v22 = vmul.f32 %v511_v11, %v511_v11  ;;  %v378_v53 = vmul.f32 %v519_v12, %v519_v12 }
  0xda   : > { %v284_v13 = vpop.f32.mrf.mxu0  ;;  %v316_v15 = vpop.f32.mrf.mxu1 }
  0xdb   : > { %v368_v17 = vmul.f32 %v284_v13, %v284_v13  ;;  %v376_v46 = vmul.f32 %v316_v15, %v316_v15 }
  0xdc   : > { %v512_v14 = vpop.f32.mrf.mxu0  ;;  %v520_v21 = vpop.f32.mrf.mxu1 }
  0xdd   : > { %v371_v26 = vmul.f32 %v512_v14, %v512_v14  ;;  %v379_v56 = vmul.f32 %v520_v21, %v520_v21 }
  0xde   : > { %v287_v16 = vpop.f32.mrf.mxu0  ;;  %v319_v30 = vpop.f32.mrf.mxu1 }
  0xdf   : > { %v347_v18 = vadd.f32 %v287_v16, %v284_v13  ;;  %v369_v19 = vmul.f32 %v287_v16, %v287_v16  ;;  %v377_v50 = vmul.f32 %v319_v30, %v319_v30 }
  0xe0   : > { %v515_v20 = vpop.f32.mrf.mxu0  ;;  %v523_v38 = vpop.f32.mrf.mxu1 }
  0xe1   : > { %v348_v23 = vadd.f32 %v511_v11, %v347_v18  ;;  %v384_v24 = vadd.f32 %v369_v19, %v368_v17  ;;  %v374_v39 = vmul.f32 %v515_v20, %v515_v20  ;;  %v382_v2 = vmul.f32 %v523_v38, %v523_v38 }
  0xe2   : > { %v300_v25 = vpop.f32.mrf.mxu0  ;;  %v332_v45 = vpop.f32.mrf.mxu1 }
  0xe3   : > { %v385_v27 = vadd.f32 %v384_v24, %v370_v22  ;;  %v349_v28 = vadd.f32 %v512_v14, %v348_v23  ;;  %v372_v32 = vmul.f32 %v300_v25, %v300_v25  ;;  %v380_v61 = vmul.f32 %v332_v45, %v332_v45 }
  0xe4   : > { %v516_v29 = vpop.f32.mrf.mxu0  ;;  %v524_v52 = vpop.f32.mrf.mxu1 }
  0xe5   : > { %v350_v31 = vadd.f32 %v349_v28, %v300_v25  ;;  %v386_v33 = vadd.f32 %v385_v27, %v371_v26  ;;  %v375_v42 = vmul.f32 %v516_v29, %v516_v29  ;;  %v383_v5 = vmul.f32 %v524_v52, %v524_v52 }
  0xe6   : > { %v303_v34 = vpop.f32.mrf.mxu0  ;;  %v335_v59 = vpop.f32.mrf.mxu1 }
  0xe7   : > { %v387_v35 = vadd.f32 %v386_v33, %v372_v32  ;;  %v351_v36 = vadd.f32 %v350_v31, %v303_v34  ;;  %v373_v37 = vmul.f32 %v303_v34, %v303_v34  ;;  %v381_v1 = vmul.f32 %v335_v59, %v335_v59 }
  0xe9   : > { %v352_v40 = vadd.f32 %v515_v20, %v351_v36  ;;  %v388_v41 = vadd.f32 %v387_v35, %v373_v37 }
  0xeb   : > { %v353_v43 = vadd.f32 %v516_v29, %v352_v40  ;;  %v389_v44 = vadd.f32 %v388_v41, %v374_v39 }
  0xed   : > { %v390_v47 = vadd.f32 %v389_v44, %v375_v42  ;;  %v354_v48 = vadd.f32 %v353_v43, %v316_v15 }
  0xef   : > { %v355_v49 = vadd.f32 %v354_v48, %v319_v30  ;;  %v391_v51 = vadd.f32 %v390_v47, %v376_v46 }
  0xf1   : > { %v356_v54 = vadd.f32 %v519_v12, %v355_v49  ;;  %v392_v55 = vadd.f32 %v391_v51, %v377_v50 }
  0xf3   : > { %v393_v57 = vadd.f32 %v392_v55, %v378_v53  ;;  %v357_v58 = vadd.f32 %v520_v21, %v356_v54 }
  0xf5   : > { %v358_v60 = vadd.f32 %v357_v58, %v332_v45  ;;  %v394_v62 = vadd.f32 %v393_v57, %v379_v56 }
  0xf7   : > { %v395_v63 = vadd.f32 %v394_v62, %v380_v61  ;;  %v359_v0 = vadd.f32 %v358_v60, %v335_v59 }
  0xf9   : > { %v360_v3 = vadd.f32 %v523_v38, %v359_v0  ;;  %v396_v4 = vadd.f32 %v395_v63, %v381_v1 }
  0xfb   : > { %v361_v6 = vadd.f32 %v524_v52, %v360_v3  ;;  %v397_v7 = vadd.f32 %v396_v4, %v382_v2 }
  0xfd   : > { %v362_v8 = vrot.slane %v361_v6, 4  ;;  %v398_v9 = vadd.f32 %v397_v7, %v383_v5 }
  0xff   : > { %v363_v10 = vadd.f32 %v362_v8, %v361_v6  ;;  %v399_v11 = vrot.slane %v398_v9, 4 }
 0x101   : > { %v364_v12 = vrot.slane %v363_v10, 2  ;;  %v400_v13 = vadd.f32 %v399_v11, %v398_v9 }
 0x103   : > { %v365_v14 = vadd.f32 %v364_v12, %v363_v10  ;;  %v401_v15 = vrot.slane %v400_v13, 2 }
 0x105   : > { %v366_v16 = vrot.slane %v365_v14, 1  ;;  %v402_v17 = vadd.f32 %v401_v15, %v400_v13 }
 0x107   : > { %v403_v18 = vrot.slane %v402_v17, 1  ;;  %v367_v19 = vadd.f32 %v366_v16, %v365_v14 }
 0x109   : > { %v404_v20 = vadd.f32 %v403_v18, %v402_v17 }
 0x10b   : > { %v406_v21 = vsel %vm405_vm1, %v367_v19, %v404_v20 }
 0x10c   : > { %v408_v22 = vsel %vm407_vm2, %v406_v21, 0.0 }
 0x10d   : > { %409 = vst [vmem:[%s143_s25] sm:$0xff] %v408_v22 }
 0x10e PF: > { %s12_s9 = sadd.s32 1, %s556_s9  }
 0x10f   : > { %p9_p5 = scmp.ge.s32.totalorder %s12_s9, 6  }
 0x111   :  { %11 = sbr.rel (!%p9_p5) target bundleno = 1 (0x1), region = 58 }

// kernel: conv_bn_relu.3
= control target key start
LH: loop header
LB: loop body
LE: loop exit
PB: predicated region body
PF: predicated region fallthrough
CT: control target
= control target key end

     0   :  { %s661_s15 = smov 0   ;;  %s759_s0 = inlined_call_operand.vmem [shape: bf16[512,48], index: 0, kind: input, shape index: {}]   ;;  %s760_s1 = inlined_call_operand.vmem [shape: bf16[48,128], index: 1, kind: input, shape index: {}]   ;;  %s761_s2 = inlined_call_operand.vmem [shape: f32[1,128], index: 2, kind: input, shape index: {}]   ;;  %s762_s3 = inlined_call_operand.vmem [shape: f32[1,128], index: 3, kind: input, shape index: {}]   ;;  %s763_s4 = inlined_call_operand.vmem [shape: f32[512,128], index: 4, kind: output, shape index: {}]  }
   0x1 LB: > { %s538_s16 = sadd.s32 4294967295, %s634_s15   ;;  %p542_p0 = scmp.ge.s32.totalorder %s634_s15, 1  ;;  %s634_s15 = sphi %s661_s15, %s14_s15  }
   0x2   : > { %p163_p1 = scmp.lt.s32.totalorder %s634_s15, 5 }
   0x4   : > { %p164_p2 = pnand %p542_p0, %p163_p1 }
   0x5   : > { %s543_s19 = sshll.u32 (!%p164_p2), %s538_s16, 4 }
   0x6   : > { %167 = sbr.rel (%p164_p2) target bundleno = 238 (0xee), region = 36  ;;  %p190_p3 = scmp.lt.s32.totalorder (!%p164_p2), %s543_s19, 63 }
   0xb   : > { %v617_v0 = vld [vmem:[%s760_s1 + $0x10] sm:$0xff]   ;;  %v618_v1 = vld [vmem:[%s760_s1 + $0x8] sm:$0xff]   ;;  %s765_s19 = smov (!%p190_p3, %s543_s19), 63  ;;  %v619_v2 = vld [vmem:[%s760_s1] sm:$0xff]   ;;  %vm282_vm0 = vcmask 392192  }
   0xc   : > { %581 = vmatprep.subr.bf16.mxu0 %v617_v0  ;;  %603 = vmatprep.subr.bf16.mxu1 %v617_v0  ;;  %s544_s24 = sshll.u32 %s765_s19, 2  ;;  %v695_v11 = vld [vmem:[%s761_s2] ss:$0 sm:$0xff]  ;;  %s546_s6 = sshll.u32 %s765_s19, 3 }
   0xd   : > { %582 = vmatpush3.bf16.msra.mxu0 %v617_v0  ;;  %606 = vmatpush3.bf16.msra.mxu1 %v617_v0  ;;  %s193_s27 = scalar_lea.vmem %s759_s0, %s544_s24  ;;  %v700_v13 = vld [vmem:[%s762_s3] ss:$0 sm:$0xff]  ;;  %s712_s9 = scalar_lea.vmem %s763_s4, %s546_s6 }
   0xe   : > { %583 = vmatprep.subr.bf16.mxu0 %v618_v1  ;;  %604 = vmatprep.subr.bf16.mxu1 %v618_v1  ;;  %v620_v3 = vld [vmem:[%s193_s27] sm:$0xff]   ;;  %v622_v5 = vld [vmem:[%s193_s27 + $0x8] sm:$0xff]   ;;  %v624_v7 = vld [vmem:[%s193_s27 + $0x10] sm:$0xff]  }
   0xf   : > { %v621_v4 = vld [vmem:[%s193_s27 + $0x20] sm:$0xff]   ;;  %587 = vmatprep.mubr.msk.bf16.mxu0 %vm282_vm0, %v620_v3  ;;  %v623_v6 = vld [vmem:[%s193_s27 + $0x28] sm:$0xff]   ;;  %v625_v8 = vld [vmem:[%s193_s27 + $0x30] sm:$0xff]  }
  0x10   : > { %595 = vmatprep.mubr.msk.bf16.mxu1 %vm282_vm0, %v621_v4  ;;  %v626_v9 = vld [vmem:[%s193_s27 + $0x18] sm:$0xff]  }
  0x11   : > { %584 = vmatpush3.bf16.msra.mxu0 %v618_v1  ;;  %607 = vmatpush3.bf16.msra.mxu1 %v618_v1  ;;  %v627_v10 = vld [vmem:[%s193_s27 + $0x38] sm:$0xff]  }
  0x12   : > { %585 = vmatprep.subr.bf16.mxu0 %v619_v2  ;;  %605 = vmatprep.subr.bf16.mxu1 %v619_v2 }
  0x15   : > { %586 = vmatpush3.bf16.msra.mxu0 %v619_v2  ;;  %608 = vmatpush3.bf16.msra.mxu1 %v619_v2 }
  0x18   : > { %588 = vmatmul.mubr.msk.bf16.vlgmr.msra.gmra.mxu0 %vm282_vm0, %v622_v5  ;;  %596 = vmatmul.mubr.msk.bf16.vlgmr.msra.gmra.mxu1 %vm282_vm0, %v623_v6 }
  0x19   : > { %591 = vmatprep.mubr.msk.bf16.mxu0 %vm282_vm0, %v624_v7  ;;  %599 = vmatprep.mubr.msk.bf16.mxu1 %vm282_vm0, %v625_v8 }
  0x20   : > { %592 = vmatmul.mubr.msk.bf16.gmra.mxu0 %vm282_vm0, %v626_v9  ;;  %600 = vmatmul.mubr.msk.bf16.gmra.mxu1 %vm282_vm0, %v627_v10 }
  0xd8   : > { %v589_v12 = vpop.f32.mrf.mxu0  ;;  %v597_v14 = vpop.f32.mrf.mxu1 }
  0xd9   : > { %v413_v15 = vmul.f32 %v589_v12, %v695_v11  ;;  %v421_v16 = vmul.f32 %v597_v14, %v695_v11 }
  0xda   : > { %v341_v17 = vpop.f32.mrf.mxu0  ;;  %v373_v18 = vpop.f32.mrf.mxu1 }
  0xdb   : > { %v436_v19 = vadd.f32 %v700_v13, %v413_v15  ;;  %v444_v20 = vadd.f32 %v700_v13, %v421_v16  ;;  %v411_v21 = vmul.f32 %v695_v11, %v341_v17  ;;  %v419_v22 = vmul.f32 %v695_v11, %v373_v18 }
  0xdc   : > { %v590_v23 = vpop.f32.mrf.mxu0  ;;  %v598_v24 = vpop.f32.mrf.mxu1 }
  0xdd   : > { %v452_v25 = vmax.f32 %v436_v19, 0.0  ;;  %v460_v26 = vmax.f32 %v444_v20, 0.0  ;;  %v434_v27 = vadd.f32 %v700_v13, %v411_v21  ;;  %v442_v28 = vadd.f32 %v700_v13, %v419_v22 }
  0xde   : > { %v414_v29 = vmul.f32 %v590_v23, %v695_v11  ;;  %v422_v30 = vmul.f32 %v598_v24, %v695_v11  ;;  %v344_v31 = vpop.f32.mrf.mxu0  ;;  %v376_v32 = vpop.f32.mrf.mxu1 }
  0xdf   : > { %468 = vst [vmem:[%s712_s9 + $0x10] sm:$0xff] %v452_v25  ;;  %476 = vst [vmem:[%s712_s9 + $0x50] sm:$0xff] %v460_v26  ;;  %v450_v33 = vmax.f32 %v434_v27, 0.0  ;;  %v458_v34 = vmax.f32 %v442_v28, 0.0  ;;  %v412_v35 = vmul.f32 %v695_v11, %v344_v31  ;;  %v420_v36 = vmul.f32 %v695_v11, %v376_v32 }
  0xe0   : > { %v437_v37 = vadd.f32 %v700_v13, %v414_v29  ;;  %v445_v38 = vadd.f32 %v700_v13, %v422_v30  ;;  %v593_v39 = vpop.f32.mrf.mxu0  ;;  %v601_v40 = vpop.f32.mrf.mxu1 }
  0xe1   : > { %466 = vst [vmem:[%s712_s9] sm:$0xff] %v450_v33  ;;  %474 = vst [vmem:[%s712_s9 + $0x40] sm:$0xff] %v458_v34  ;;  %v435_v41 = vadd.f32 %v700_v13, %v412_v35  ;;  %v443_v42 = vadd.f32 %v700_v13, %v420_v36  ;;  %v417_v43 = vmul.f32 %v593_v39, %v695_v11 }
  0xe2   : > { %v425_v44 = vmul.f32 %v601_v40, %v695_v11  ;;  %v453_v45 = vmax.f32 %v437_v37, 0.0  ;;  %v461_v46 = vmax.f32 %v445_v38, 0.0  ;;  %v357_v47 = vpop.f32.mrf.mxu0  ;;  %v389_v48 = vpop.f32.mrf.mxu1 }
  0xe3   : > { %v451_v49 = vmax.f32 %v435_v41, 0.0  ;;  %v459_v50 = vmax.f32 %v443_v42, 0.0  ;;  %v440_v51 = vadd.f32 %v700_v13, %v417_v43  ;;  %v415_v53 = vmul.f32 %v695_v11, %v357_v47 }
  0xe4   : > { %v448_v52 = vadd.f32 %v700_v13, %v425_v44  ;;  %469 = vst [vmem:[%s712_s9 + $0x18] sm:$0xff] %v453_v45  ;;  %477 = vst [vmem:[%s712_s9 + $0x58] sm:$0xff] %v461_v46  ;;  %v423_v54 = vmul.f32 %v695_v11, %v389_v48  ;;  %v594_v55 = vpop.f32.mrf.mxu0  ;;  %v602_v56 = vpop.f32.mrf.mxu1 }
  0xe5   : > { %467 = vst [vmem:[%s712_s9 + $0x8] sm:$0xff] %v451_v49  ;;  %475 = vst [vmem:[%s712_s9 + $0x48] sm:$0xff] %v459_v50  ;;  %v456_v57 = vmax.f32 %v440_v51, 0.0  ;;  %v418_v59 = vmul.f32 %v594_v55, %v695_v11  ;;  %v426_v60 = vmul.f32 %v602_v56, %v695_v11  ;;  %v438_v61 = vadd.f32 %v700_v13, %v415_v53 }
  0xe6   : > { %v464_v58 = vmax.f32 %v448_v52, 0.0  ;;  %v446_v62 = vadd.f32 %v700_v13, %v423_v54  ;;  %v360_v63 = vpop.f32.mrf.mxu0  ;;  %v392_v0 = vpop.f32.mrf.mxu1 }
  0xe7   : > { %472 = vst [vmem:[%s712_s9 + $0x30] sm:$0xff] %v456_v57  ;;  %v441_v1 = vadd.f32 %v700_v13, %v418_v59  ;;  %v449_v2 = vadd.f32 %v700_v13, %v426_v60  ;;  %v416_v3 = vmul.f32 %v695_v11, %v360_v63  ;;  %v424_v4 = vmul.f32 %v695_v11, %v392_v0 }
  0xe8   : > { %480 = vst [vmem:[%s712_s9 + $0x70] sm:$0xff] %v464_v58  ;;  %v454_v5 = vmax.f32 %v438_v61, 0.0  ;;  %v462_v6 = vmax.f32 %v446_v62, 0.0 }
  0xe9   : > { %v457_v7 = vmax.f32 %v441_v1, 0.0  ;;  %v465_v8 = vmax.f32 %v449_v2, 0.0  ;;  %v439_v9 = vadd.f32 %v700_v13, %v416_v3  ;;  %v447_v10 = vadd.f32 %v700_v13, %v424_v4 }
  0xea   : > { %470 = vst [vmem:[%s712_s9 + $0x20] sm:$0xff] %v454_v5  ;;  %478 = vst [vmem:[%s712_s9 + $0x60] sm:$0xff] %v462_v6 }
  0xeb   : > { %473 = vst [vmem:[%s712_s9 + $0x38] sm:$0xff] %v457_v7  ;;  %481 = vst [vmem:[%s712_s9 + $0x78] sm:$0xff] %v465_v8  ;;  %v455_v12 = vmax.f32 %v439_v9, 0.0  ;;  %v463_v14 = vmax.f32 %v447_v10, 0.0 }
  0xed   : > { %471 = vst [vmem:[%s712_s9 + $0x28] sm:$0xff] %v455_v12  ;;  %479 = vst [vmem:[%s712_s9 + $0x68] sm:$0xff] %v463_v14 }
  0xee PF: > { %s14_s15 = sadd.s32 1, %s634_s15  }
  0xef   : > { %p11_p4 = scmp.ge.s32.totalorder %s14_s15, 6  }
  0xf1   :  { %13 = sbr.rel (!%p11_p4) target bundleno = 1 (0x1), region = 66 }

</bundles_post_ra>
